<compile_context>
chip_gen: v7x
topology: tpu7x:2x2x1
jax: 0.10.0
libtpu: 0.0.40
codegen_flags: <defaults>
</compile_context>

<pallas_src>
import functools
import math

import jax
import jax.numpy as jnp
from jax import lax
from jax.experimental import pallas as pl
from jax.experimental.pallas import tpu as pltpu


def _self_attention_kernel(x_ref, p_ref, o_ref, *, hid):
    """Fused Self_Attention forward (channel mean + Linear/ReLU + Linear/Sigmoid).

    x_ref : (B, C, HW)       f32  input feature map (NCHW, flattened over H*W)
    p_ref : (2*HID + 2, HW)  f32  packed parameters, lane-dense:
              rows [0, HID)      = w1.T * (1/C)   (pool scale folded in)
              rows [HID, 2*HID)  = w2
              row  2*HID, :HID   = b1
              row  2*HID + 1     = b2
    o_ref : (B, HW)          f32  sigmoid attention map
    """
    # AdaptiveAvgPool3d((1, fs, fs)) on (B,1,C,H,W) == per-pixel mean over channels.
    # The 1/C normalisation is folded into w1, so this is a pure sublane sum (VPU/XLU).
    pooled = jnp.sum(x_ref[...], axis=1)                                   # (B, HW) f32

    # Static slices of the packed parameter buffer (zero-cost views).
    w1t = p_ref[0:hid, :].astype(jnp.bfloat16)                             # (HID, HW)
    w2 = p_ref[hid:2 * hid, :].astype(jnp.bfloat16)                        # (HID, HW)
    b1 = p_ref[2 * hid:2 * hid + 1, 0:hid]                                 # (1, HID) f32
    b2 = p_ref[2 * hid + 1:2 * hid + 2, :]                                 # (1, HW)  f32

    # Linear 1 + ReLU.  w1 is stored transposed (lane-dense), so contract both operands
    # on their last axis (same pattern as q @ k.T).  bf16 MXU operands, f32 accumulation.
    h = lax.dot_general(pooled.astype(jnp.bfloat16), w1t,
                        dimension_numbers=(((1,), (1,)), ((), ())),
                        preferred_element_type=jnp.float32)                # (B, HID)
    h = jnp.maximum(h + b1, 0.0)

    # Linear 2 + Sigmoid (exp runs on the EUP).  Output store is lane-dense
    # (last dim = HW, a multiple of 128).
    y = jnp.dot(h.astype(jnp.bfloat16), w2,
                preferred_element_type=jnp.float32)                        # (B, HW)
    o_ref[...] = jax.nn.sigmoid(y + b2)


def self_attention_forward(params, x):
    """x: (B, C, H, W) float32 (NCHW, like the PyTorch module) -> (B, 1, H, W) float32."""
    B, C, H, W = x.shape
    fs = params["feature_size"]
    # The PyTorch forward's `.view(b, h*w)` after the adaptive pool is only valid when
    # H == W == feature_size, which is how the module is used inside RNet.
    assert H == fs and W == fs, (H, W, fs)
    # The 1/C pool scale is folded into the packed w1, so C is fixed at packing time.
    assert C == params["channels"], (C, params["channels"])
    HW = H * W
    hid = HW // 8

    x3 = x.reshape(B, C, HW).astype(jnp.float32)   # contiguous NCHW -> free reshape
    packed = params["packed"]

    # Advisory cost hint: two GEMMs + channel sum; one sigmoid exp per output element.
    flops = 4 * B * HW * hid + B * C * HW
    bytes_accessed = (x3.size + packed.size + B * HW) * 4
    vmem = pl.BlockSpec(memory_space=pltpu.MemorySpace.VMEM)

    # All operands fit comfortably in VMEM at these shapes, so the whole module runs as a
    # single un-gridded, VMEM-resident fused kernel: 2 input DMAs + 1 output DMA total.
    y = pl.pallas_call(
        functools.partial(_self_attention_kernel, hid=hid),
        out_shape=jax.ShapeDtypeStruct((B, HW), jnp.float32),
        in_specs=[vmem, vmem],
        out_specs=vmem,
        cost_estimate=pl.CostEstimate(flops=flops, transcendentals=B * HW,
                                      bytes_accessed=bytes_accessed),
    )(x3, packed)
    return y.reshape(B, 1, H, W)


def init_self_attention(key, feature_size, channels):
    """Deterministic parameters, packed into one lane-dense f32 buffer for the kernel."""
    hw = feature_size * feature_size
    hid = hw // 8
    k1, k2, k3, k4 = jax.random.split(key, 4)
    bound1 = 1.0 / math.sqrt(hw)     # nn.Linear default init bounds (fan_in based)
    bound2 = 1.0 / math.sqrt(hid)
    w1 = jax.random.uniform(k1, (hw, hid), jnp.float32, -bound1, bound1)
    b1 = jax.random.uniform(k2, (hid,), jnp.float32, -bound1, bound1)
    w2 = jax.random.uniform(k3, (hid, hw), jnp.float32, -bound2, bound2)
    b2 = jax.random.uniform(k4, (hw,), jnp.float32, -bound2, bound2)

    # Pack all static parameters into ONE contiguous (2*HID + 2, HW) f32 buffer:
    #   * w1 stored transposed so every row is lane-dense (HW lanes, multiple of 128),
    #     instead of the lane-padded (HW, HID) layout.
    #   * 1/C AdaptiveAvgPool scale folded into w1.
    #   * b1 sits in the first HID lanes of its row (rest zero), b2 fills its row.
    packed = jnp.zeros((2 * hid + 2, hw), jnp.float32)
    packed = packed.at[0:hid, :].set(w1.T / float(channels))
    packed = packed.at[hid:2 * hid, :].set(w2)
    packed = packed.at[2 * hid, 0:hid].set(b1)
    packed = packed.at[2 * hid + 1, :].set(b2)

    return {
        "feature_size": feature_size,
        "channels": channels,
        "packed": packed,
        # Full-precision copies kept only for the pure-JAX reference check.
        "w1": w1, "b1": b1, "w2": w2, "b2": b2,
    }


def reference_forward(params, x):
    """Pure-JAX f32 reference of the PyTorch module (true f32 weights, f32 math)."""
    B, C, H, W = x.shape
    pooled = x.reshape(B, C, H * W).astype(jnp.float32).mean(axis=1)
    h = jnp.maximum(pooled @ params["w1"] + params["b1"], 0.0)
    y = jax.nn.sigmoid(h @ params["w2"] + params["b2"])
    return y.reshape(B, 1, H, W)


if __name__ == "__main__":
    key = jax.random.PRNGKey(0)
    pkey, xkey = jax.random.split(key)

    # Small shapes consistent with the module: batch=2, channels=4, feature_size=16
    # (so H = W = 16, H*W = 256, hidden = 256 // 8 = 32).
    B, C, FS = 2, 4, 16
    params = init_self_attention(pkey, FS, C)
    x = jax.random.normal(xkey, (B, C, FS, FS), jnp.float32)   # NCHW, like the PyTorch module

    fwd = jax.jit(lambda inp: self_attention_forward(params, inp))
    out = fwd(x)
    jax.block_until_ready(out)

    assert out.shape == (B, 1, FS, FS), out.shape
    assert bool(jnp.all(jnp.isfinite(out)))

    ref = reference_forward(params, x)
    max_err = float(jnp.max(jnp.abs(out - ref)))
    assert max_err < 1e-2, f"max |kernel - reference| = {max_err}"

    print("KERNEL_OK")
</pallas_src>

<mosaic_0001>
module attributes {stable_mosaic.version = 11 : i64} {
  func.func @_self_attention_kernel(%arg0: memref<2x4x256xf32, #tpu.memory_space<vmem>>, %arg1: memref<66x256xf32, #tpu.memory_space<vmem>>, %arg2: memref<2x256xf32, #tpu.memory_space<vmem>>) attributes {dimension_semantics = [], scalar_prefetch = 0 : i64, scratch_operands = 0 : i64, tpu.core_type = #tpu.core_type<tc>} {
    %c0 = arith.constant 0 : index
    %c0_0 = arith.constant 0 : index
    %c0_1 = arith.constant 0 : index
    %0 = vector.load %arg0[%c0, %c0_0, %c0_1] : memref<2x4x256xf32, #tpu.memory_space<vmem>>, vector<2x4x256xf32>
    %cst = arith.constant dense<0.000000e+00> : vector<2x256xf32>
    %1 = vector.multi_reduction <add>, %0, %cst [1] : vector<2x4x256xf32> to vector<2x256xf32>
    %c0_2 = arith.constant 0 : index
    %c0_3 = arith.constant 0 : index
    %2 = vector.load %arg1[%c0_2, %c0_3] : memref<66x256xf32, #tpu.memory_space<vmem>>, vector<32x256xf32>
    %3 = arith.truncf %2 : vector<32x256xf32> to vector<32x256xbf16>
    %c32 = arith.constant 32 : index
    %c0_4 = arith.constant 0 : index
    %4 = vector.load %arg1[%c32, %c0_4] : memref<66x256xf32, #tpu.memory_space<vmem>>, vector<32x256xf32>
    %5 = arith.truncf %4 : vector<32x256xf32> to vector<32x256xbf16>
    %c64 = arith.constant 64 : index
    %c0_5 = arith.constant 0 : index
    %6 = vector.load %arg1[%c64, %c0_5] : memref<66x256xf32, #tpu.memory_space<vmem>>, vector<1x32xf32>
    %c65 = arith.constant 65 : index
    %c0_6 = arith.constant 0 : index
    %7 = vector.load %arg1[%c65, %c0_6] : memref<66x256xf32, #tpu.memory_space<vmem>>, vector<1x256xf32>
    %8 = arith.truncf %1 : vector<2x256xf32> to vector<2x256xbf16>
    %cst_7 = arith.constant dense<0.000000e+00> : vector<2x32xf32>
    %9 = tpu.matmul %8, %3, %cst_7 {dimension_numbers = #tpu.dot_dimension_numbers<[1], [1], [0], [0], [0, 0, 1, 0], [], []>} : vector<2x256xbf16>, vector<32x256xbf16>, vector<2x32xf32> -> vector<2x32xf32>
    %10 = vector.broadcast %6 : vector<1x32xf32> to vector<2x32xf32>
    %11 = arith.addf %9, %10 : vector<2x32xf32>
    %cst_8 = arith.constant 0.000000e+00 : f32
    %12 = vector.broadcast %cst_8 : f32 to vector<2x32xf32>
    %13 = arith.maximumf %11, %12 : vector<2x32xf32>
    %14 = arith.truncf %13 : vector<2x32xf32> to vector<2x32xbf16>
    %cst_9 = arith.constant dense<0.000000e+00> : vector<2x256xf32>
    %15 = tpu.matmul %14, %5, %cst_9 {dimension_numbers = #tpu.dot_dimension_numbers<[1], [0], [0], [1], [0, 0, 1, 1], [], []>} : vector<2x32xbf16>, vector<32x256xbf16>, vector<2x256xf32> -> vector<2x256xf32>
    %16 = vector.broadcast %7 : vector<1x256xf32> to vector<2x256xf32>
    %17 = arith.addf %15, %16 : vector<2x256xf32>
    %18 = arith.negf %17 : vector<2x256xf32>
    %19 = math.exp %18 : vector<2x256xf32>
    %cst_10 = arith.constant 1.000000e+00 : f32
    %20 = vector.broadcast %cst_10 : f32 to vector<2x256xf32>
    %21 = arith.addf %20, %19 : vector<2x256xf32>
    %22 = arith.divf %20, %21 : vector<2x256xf32>
    %c0_11 = arith.constant 0 : index
    %c0_12 = arith.constant 0 : index
    %23 = vector.load %arg2[%c0_11, %c0_12] : memref<2x256xf32, #tpu.memory_space<vmem>>, vector<2x256xf32>
    tpu.vector_store %arg2[%c0_11, %c0_12], %22 {strides = array<i32>} : memref<2x256xf32, #tpu.memory_space<vmem>>, vector<2x256xf32>,
    return
  }
}

</mosaic_0001>

<bundles_post_ra>
// kernel: _lambda_.1
= control target key start
LH: loop header
LB: loop body
LE: loop exit
PB: predicated region body
PF: predicated region fallthrough
CT: control target
= control target key end

     0   :  { %vm20_vm0 = vcmask 1043456   ;;  %vm88_vm1 = vcmask 1041409   ;;  %vm148_vm2 = vcmask 261120   ;;  %s320_s1 = inlined_call_operand.vmem [shape: f32[66,256], index: 1, kind: input, shape index: {}]   ;;  %s321_s0 = inlined_call_operand.vmem [shape: f32[2,4,256], index: 0, kind: input, shape index: {}]   ;;  %s322_s2 = inlined_call_operand.vmem [shape: f32[2,256], index: 2, kind: output, shape index: {}]  }
   0x1   :  { %v50_v0 = vld [vmem:[%s320_s1 + $0x8] sm:$0xff]  ;;  %v52_v1 = vld [vmem:[%s320_s1 + $0x18] sm:$0xff]  ;;  %v49_v2 = vld [vmem:[%s320_s1] sm:$0xff] }
   0x2   :  { %v58_v3 = vpack.c.bf16 %v52_v1, %v50_v0  ;;  %v51_v4 = vld [vmem:[%s320_s1 + $0x10] sm:$0xff]  ;;  %v54_v5 = vld [vmem:[%s320_s1 + $0x28] sm:$0xff]  ;;  %v56_v6 = vld [vmem:[%s320_s1 + $0x38] sm:$0xff] }
   0x3   :  { %v57_v7 = vpack.c.bf16 %v51_v4, %v49_v2  ;;  %v60_v8 = vpack.c.bf16 %v56_v6, %v54_v5  ;;  %v12_v9 = vld [vmem:[%s321_s0] sm:$0xff]  ;;  %v13_v10 = vld [vmem:[%s321_s0 + $0x8] sm:$0xff]  ;;  %v64_v14 = vld [vmem:[%s320_s1 + $0x58] sm:$0xff]  ;;  %v237_v4 = vmov 0  }
   0x4   :  { %95 = vmatprep.subr.bf16.mxu0 %v58_v3  ;;  %v16_v11 = vcombine.high %v12_v9, %v12_v9  ;;  %v21_v12 = vsel %vm20_vm0, %v12_v9, 0.0  ;;  %v62_v13 = vld [vmem:[%s320_s1 + $0x48] sm:$0xff]  ;;  %v17_v15 = vcombine.high %v13_v10, %v13_v10  ;;  %v35_v17 = vsel %vm20_vm0, %v13_v10, 0.0  ;;  %v53_v19 = vld [vmem:[%s320_s1 + $0x20] sm:$0xff]  ;;  %v55_v20 = vld [vmem:[%s320_s1 + $0x30] sm:$0xff]  ;;  %184 = vmatprep.mubr.bf16.mxu1 %v237_v4 }
   0x5   :  { %96 = vmatpush1.bf16.xpose.msra.mxu0 %v57_v7  ;;  %v22_v16 = vrot.slane %v21_v12, 4  ;;  %v70_v18 = vpack.c.bf16 %v64_v14, %v62_v13  ;;  %v36_v22 = vrot.slane %v35_v17, 4  ;;  %v59_v28 = vpack.c.bf16 %v55_v20, %v53_v19  ;;  %v61_v59 = vld [vmem:[%s320_s1 + $0x40] sm:$0xff]  ;;  %v63_v60 = vld [vmem:[%s320_s1 + $0x50] sm:$0xff]  ;;  %v66_v62 = vld [vmem:[%s320_s1 + $0x68] sm:$0xff] }
   0x6   :  { %97 = vmatprep.subr.bf16.mxu0 %v60_v8  ;;  %v28_v21 = vsel %vm20_vm0, %v16_v11, 0.0  ;;  %v42_v24 = vsel %vm20_vm0, %v17_v15, 0.0  ;;  %v69_v61 = vpack.c.bf16 %v63_v60, %v61_v59  ;;  %v68_v63 = vld [vmem:[%s320_s1 + $0x78] sm:$0xff]  ;;  %v65_v1 = vld [vmem:[%s320_s1 + $0x60] sm:$0xff]  ;;  %v67_v2 = vld [vmem:[%s320_s1 + $0x70] sm:$0xff]  ;;  %v138_v13 = vlaneseq }
   0x7   :  { %v29_v23 = vrot.slane %v28_v21, 4  ;;  %v23_v25 = vadd.f32 %v22_v16, %v21_v12  ;;  %152 = vmatprep.subr.bf16.mxu1 %v70_v18  ;;  %v43_v26 = vrot.slane %v42_v24, 4  ;;  %v37_v27 = vadd.f32 %v36_v22, %v35_v17  ;;  %v73_v5 = vld [vmem:[%s320_s1 + $0x80] ss:$0 sm:$0xff] }
   0x8   :  { %153 = vmatpush1.bf16.msra.mxu1 %v69_v61  ;;  %v72_v0 = vpack.c.bf16 %v68_v63, %v66_v62  ;;  %v71_v3 = vpack.c.bf16 %v67_v2, %v65_v1  ;;  %v139_v14 = vshrl.u32 %v138_v13, 7  ;;  %v221_v16 = vld [vmem:[%s320_s1 + $0x81] ss:$8 sm:$0x3] }
   0x9   :  { %v30_v29 = vadd.f32 %v29_v23, %v28_v21  ;;  %v24_v30 = vrot.slane %v23_v25, 2  ;;  %v44_v31 = vadd.f32 %v43_v26, %v42_v24  ;;  %v38_v32 = vrot.slane %v37_v27, 2 }
   0xa   :  { %154 = vmatprep.subr.bf16.mxu1 %v72_v0  ;;  %v140_v15 = vsub.s32 0, %v139_v14  ;;  %v144_v17 = vsub.s32 1, %v139_v14 }
   0xb   :  { %v31_v33 = vrot.slane %v30_v29, 2  ;;  %v25_v34 = vadd.f32 %v24_v30, %v23_v25  ;;  %v45_v35 = vrot.slane %v44_v31, 2  ;;  %v39_v36 = vadd.f32 %v38_v32, %v37_v27 }
   0xc   :  { %155 = vmatpush1.bf16.msra.mxu1 %v71_v3  ;;  %v141_v18 = vrot.slane %v221_v16, %v140_v15  ;;  %v145_v19 = vrot.slane %v221_v16, %v144_v17 }
   0xd   :  { %98 = vmatpush1.bf16.xpose.msra.mxu0 %v59_v28  ;;  %v32_v37 = vadd.f32 %v31_v33, %v30_v29  ;;  %v26_v38 = vrot.slane %v25_v34, 1  ;;  %v46_v39 = vadd.f32 %v45_v35, %v44_v31  ;;  %v40_v40 = vrot.slane %v39_v36, 1 }
   0xf   :  { %v33_v41 = vrot.slane %v32_v37, 1  ;;  %v27_v42 = vadd.f32 %v26_v38, %v25_v34  ;;  %v47_v43 = vrot.slane %v46_v39, 1  ;;  %v41_v44 = vadd.f32 %v40_v40, %v39_v36 }
  0x11   :  { %v34_v45 = vadd.f32 %v33_v41, %v32_v37  ;;  %v76_v46 = vpack.c.bf16 %v27_v42, %v27_v42  ;;  %v48_v47 = vadd.f32 %v47_v43, %v46_v39  ;;  %v78_v48 = vpack.c.bf16 %v41_v44, %v41_v44 }
  0x13   :  { %v77_v49 = vpack.c.bf16 %v34_v45, %v34_v45  ;;  %v84_v50 = vunpack.c.l.b16 %v76_v46  ;;  %v79_v51 = vpack.c.bf16 %v48_v47, %v48_v47  ;;  %v86_v52 = vunpack.c.l.b16 %v78_v48 }
  0x15   :  { %v85_v53 = vunpack.c.l.b16 %v77_v49  ;;  %v87_v54 = vunpack.c.l.b16 %v79_v51  ;;  %v89_v55 = vsel %vm88_vm1, %v86_v52, %v84_v50 }
  0x16   :  { %v91_v57 = vpack.c.b16 %v89_v55, %v89_v55 }
  0x17   :  { %v90_v56 = vsel %vm88_vm1, %v87_v54, %v85_v53 }
  0x18   :  { %v92_v58 = vpack.c.b16 %v90_v56, %v90_v56 }
  0x1a   :  { %127 = vmatprep.mubr.bf16.mxu0 %v92_v58 }
  0x1b   :  { %128 = vmatmul.mubr.bf16.vlgmr.msra.gmra.mrb[0].mxu0 %v91_v57 }
  0xee   :  { %v129_v6 = vpop.f32.mrb[0].mxu0 }
  0xef   :  { %v130_v7 = vadd.f32 %v129_v6, %v73_v5  ;;  %v131_v8 = vpop.f32.mrb[1].mxu0 }
  0xf0   :  { %v132_v9 = vpop.f32.mrb[2].mxu0 }
  0xf1   :  { %v135_v10 = vmax.f32 %v130_v7, 0.0  ;;  %v133_v11 = vpop.f32.mrb[3].mxu0 }
  0xf3   :  { %v136_v12 = vpack.c.bf16 %v135_v10, %v135_v10 }
  0xf5   :  { %222 = vmatmul.mubr.msk.bf16.vlgmr.msra.gmra.mrb[0].mxu1 %vm148_vm2, %v136_v12 }
 0x1c8   :  { %v186_v20 = vpop.f32.mrb[0].mxu1 }
 0x1c9   :  { %v187_v21 = vadd.f32 %v186_v20, %v141_v18  ;;  %v188_v22 = vpop.f32.mrb[1].mxu1 }
 0x1ca   :  { %v189_v23 = vadd.f32 %v188_v22, %v145_v19  ;;  %v190_v24 = vpop.f32.mrb[2].mxu1 }
 0x1cb   :  { %v223_v25 = vmul.f32 -1.442695, %v187_v21  ;;  %v191_v26 = vpop.f32.mrb[3].mxu1 }
 0x1cc   :  { %v224_v27 = vmul.f32 -1.442695, %v189_v23 }
 0x1cd   :  { %229 = vpow2.f32 %v223_v25 }
 0x1ce   :  { %231 = vpow2.f32 %v224_v27 }
 0x1d7   :  { %v230_v28 = vpop.eup %229 }
 0x1d8   :  { %v232_v29 = vpop.eup %231  ;;  %v199_v30 = vadd.f32 1.0, %v230_v28 }
 0x1d9   :  { %v200_v31 = vadd.f32 1.0, %v232_v29 }
 0x1da   :  { %233 = vrcp.f32 %v199_v30 }
 0x1db   :  { %235 = vrcp.f32 %v200_v31 }
 0x1e4   :  { %v234_v32 = vpop.eup %233 }
 0x1e5   :  { %v236_v33 = vpop.eup %235 }
 0x1e6   :  { %v207_v34 = vcombine.low %v234_v32, %v236_v33 }
 0x1e8   :  { %225 = vst.sshfl [vmem:[%s322_s2] sm:$0x33 pattern:$0x76325410] %v207_v34 }

</bundles_post_ra>
